<compile_context>
chip_gen: v6e
topology: v6e:2x2x1
jax: 0.10.0
libtpu: 0.0.40
codegen_flags: <defaults>
</compile_context>

<pallas_src>
import functools

import jax
import jax.numpy as jnp
from jax.experimental import pallas as pl
from jax.experimental.pallas import tpu as pltpu


# --------------------------------------------------------------------------
# Kernel: fused |x|^2 (VPU) + in-kernel bit-matrix generation + projection
# matmul (MXU).  x_ref holds [real plane | imag plane] concatenated on lanes.
# --------------------------------------------------------------------------
def exp_kernel(x_ref, o_ref):
    x = x_ref[...]                      # (bb, 2*D) f32
    p = x * x                           # squared magnitudes per lane (VPU)

    K = x_ref.shape[1]                  # 2 * 2**n_qubit (contraction dim)
    N = o_ref.shape[1]                  # n_qubit (output columns)

    # Row-duplicated bit matrix, built on the fly (never stored in HBM):
    #   m2[j, i] = bit i of (j mod D) = (j >> i) & 1     (valid since i < n_qubit,
    #   so the extra high bit of j in the imag half never leaks in).
    row = jax.lax.broadcasted_iota(jnp.int32, (K, N), 0)
    col = jax.lax.broadcasted_iota(jnp.int32, (K, N), 1)
    m2 = ((row >> col) & 1).astype(jnp.float32)

    # p @ m2 == xr^2 @ m + xi^2 @ m  -> single MXU dot, f32 accumulation.
    o_ref[...] = jnp.dot(p, m2, preferred_element_type=jnp.float32)


# --------------------------------------------------------------------------
# Wrapper: Exp.forward on a batch of complex states x of shape (B, 2**n_qubit).
# --------------------------------------------------------------------------
@functools.partial(jax.jit, static_argnames=("n_qubit", "block_b"))
def exp_forward(x, *, n_qubit: int, block_b: int = 512):
    assert n_qubit < 30, "in-kernel int32 bit extraction assumes n_qubit < 30"
    B, D = x.shape
    assert D == 2 ** n_qubit, "last dim of x must be 2**n_qubit"

    # Split complex -> one concatenated f32 operand [re | im] of shape (B, 2D).
    # (Pallas has no complex dtype; one split copy is unavoidable, so keep it
    #  to a single operand / single input DMA stream.)
    xr = jnp.real(x).astype(jnp.float32)
    xi = jnp.imag(x).astype(jnp.float32)
    x_f32 = jnp.concatenate([xr, xi], axis=-1)          # (B, 2D)

    bb = min(block_b, B)                                # batch tile (rows)
    grid = (pl.cdiv(B, bb),)
    return pl.pallas_call(
        exp_kernel,
        out_shape=jax.ShapeDtypeStruct((B, n_qubit), jnp.float32),
        grid=grid,
        in_specs=[pl.BlockSpec((bb, 2 * D), lambda i: (i, 0))],
        out_specs=pl.BlockSpec((bb, n_qubit), lambda i: (i, 0)),
        compiler_params=pltpu.CompilerParams(
            dimension_semantics=("parallel",)),
    )(x_f32)


# --------------------------------------------------------------------------
# Pure-JAX reference (mirrors the PyTorch forward) for a correctness check.
# --------------------------------------------------------------------------
def exp_forward_ref(x, n_qubit: int):
    r = jnp.arange(2 ** n_qubit, dtype=jnp.int32)
    mask = jnp.left_shift(jnp.int32(1), jnp.arange(n_qubit, dtype=jnp.int32))
    m = (jnp.bitwise_and(r[:, None], mask[None, :]) != 0).astype(jnp.float32)
    return (jnp.abs(x).astype(jnp.float32) ** 2) @ m


if __name__ == "__main__":
    n_qubit = 5                 # Hilbert dim D = 32
    D = 2 ** n_qubit
    B = 256                     # small batch; block_b=128 -> 2 parallel blocks

    key = jax.random.PRNGKey(0)
    kr, ki = jax.random.split(key)
    x = (jax.random.normal(kr, (B, D), dtype=jnp.float32)
         + 1j * jax.random.normal(ki, (B, D), dtype=jnp.float32))
    x = x.astype(jnp.complex64)

    out = exp_forward(x, n_qubit=n_qubit, block_b=128)
    jax.block_until_ready(out)

    ref = exp_forward_ref(x, n_qubit)
    assert out.shape == (B, n_qubit)
    assert jnp.allclose(out, ref, atol=1e-4, rtol=1e-4)

    print("KERNEL_OK")
</pallas_src>

<mosaic_0001>
module attributes {stable_mosaic.version = 11 : i64} {
  func.func @exp_kernel(%arg0: i32, %arg1: memref<128x64xf32, #tpu.memory_space<vmem>>, %arg2: memref<128x5xf32, #tpu.memory_space<vmem>>) attributes {dimension_semantics = [#tpu.dimension_semantics<parallel>], iteration_bounds = array<i64: 2>, scalar_prefetch = 0 : i64, scratch_operands = 0 : i64, tpu.core_type = #tpu.core_type<tc>, window_params = [{transform_indices = @transform_0, window_bounds = array<i64: 128, 64>}, {transform_indices = @transform_1, window_bounds = array<i64: 128, 5>}]} {
    %c0 = arith.constant 0 : index
    %c0_0 = arith.constant 0 : index
    %0 = vector.load %arg1[%c0, %c0_0] : memref<128x64xf32, #tpu.memory_space<vmem>>, vector<128x64xf32>
    %1 = arith.mulf %0, %0 : vector<128x64xf32>
    %2 = tpu.iota {dimensions = array<i32: 0>} : vector<64x5xi32>
    %3 = tpu.iota {dimensions = array<i32: 1>} : vector<64x5xi32>
    %4 = arith.shrsi %2, %3 : vector<64x5xi32>
    %c1_i32 = arith.constant 1 : i32
    %5 = vector.broadcast %c1_i32 : i32 to vector<64x5xi32>
    %6 = arith.andi %4, %5 : vector<64x5xi32>
    %7 = arith.sitofp %6 : vector<64x5xi32> to vector<64x5xf32>
    %cst = arith.constant dense<0.000000e+00> : vector<128x5xf32>
    %8 = tpu.matmul %1, %7, %cst {dimension_numbers = #tpu.dot_dimension_numbers<[1], [0], [0], [1], [0, 0, 1, 1], [], []>} : vector<128x64xf32>, vector<64x5xf32>, vector<128x5xf32> -> vector<128x5xf32>
    %c0_1 = arith.constant 0 : index
    %c0_2 = arith.constant 0 : index
    %9 = vector.load %arg2[%c0_1, %c0_2] : memref<128x5xf32, #tpu.memory_space<vmem>>, vector<128x5xf32>
    tpu.vector_store %arg2[%c0_1, %c0_2], %8 {strides = array<i32>} : memref<128x5xf32, #tpu.memory_space<vmem>>, vector<128x5xf32>,
    return
  }
  func.func @transform_0(%arg0: i32) -> (i32, i32) {
    %c0_i32 = arith.constant 0 : i32
    %c0_i32_0 = arith.constant 0 : i32
    return %arg0, %c0_i32 : i32, i32
  }
  func.func @transform_1(%arg0: i32) -> (i32, i32) {
    %c0_i32 = arith.constant 0 : i32
    %c0_i32_0 = arith.constant 0 : i32
    return %arg0, %c0_i32 : i32, i32
  }
}

</mosaic_0001>

<bundles_post_ra>
// kernel: custom-call.1
= control target key start
LH: loop header
LB: loop body
LE: loop exit
PB: predicated region body
PF: predicated region fallthrough
CT: control target
= control target key end

     0   :  { %s425_s0 = inlined_call_operand.vmem [shape: c64[256,32], index: 0, kind: input, shape index: {}]   ;;  %s426_s1 = inlined_call_operand.vmem [shape: f32[256,32], index: 1, kind: output, shape index: {}]  }
   0x1   :  { %v160_v0 = vld [vmem:[%s425_s0 + $0x100] sm:$0xff]  ;;  %v161_v1 = vld [vmem:[%s425_s0 + $0x108] sm:$0xff]  ;;  %v163_v2 = vld [vmem:[%s425_s0 + $0x110] sm:$0xff] }
   0x2   :  { %4 = vst [vmem:[%s426_s1] sm:$0xff] %v160_v0  ;;  %162 = vst [vmem:[%s426_s1 + $0x8] sm:$0xff] %v161_v1  ;;  %v165_v3 = vld [vmem:[%s425_s0 + $0x118] sm:$0xff]  ;;  %v167_v4 = vld [vmem:[%s425_s0 + $0x120] sm:$0xff] }
   0x3   :  { %164 = vst [vmem:[%s426_s1 + $0x10] sm:$0xff] %v163_v2  ;;  %v169_v5 = vld [vmem:[%s425_s0 + $0x128] sm:$0xff]  ;;  %166 = vst [vmem:[%s426_s1 + $0x18] sm:$0xff] %v165_v3  ;;  %v171_v6 = vld [vmem:[%s425_s0 + $0x130] sm:$0xff] }
   0x4   :  { %168 = vst [vmem:[%s426_s1 + $0x20] sm:$0xff] %v167_v4  ;;  %170 = vst [vmem:[%s426_s1 + $0x28] sm:$0xff] %v169_v5  ;;  %v173_v7 = vld [vmem:[%s425_s0 + $0x138] sm:$0xff]  ;;  %v175_v8 = vld [vmem:[%s425_s0 + $0x140] sm:$0xff] }
   0x5   :  { %172 = vst [vmem:[%s426_s1 + $0x30] sm:$0xff] %v171_v6  ;;  %174 = vst [vmem:[%s426_s1 + $0x38] sm:$0xff] %v173_v7  ;;  %v177_v9 = vld [vmem:[%s425_s0 + $0x148] sm:$0xff]  ;;  %v179_v10 = vld [vmem:[%s425_s0 + $0x150] sm:$0xff] }
   0x6   :  { %176 = vst [vmem:[%s426_s1 + $0x40] sm:$0xff] %v175_v8  ;;  %v181_v11 = vld [vmem:[%s425_s0 + $0x158] sm:$0xff]  ;;  %178 = vst [vmem:[%s426_s1 + $0x48] sm:$0xff] %v177_v9  ;;  %v183_v12 = vld [vmem:[%s425_s0 + $0x160] sm:$0xff] }
   0x7   :  { %180 = vst [vmem:[%s426_s1 + $0x50] sm:$0xff] %v179_v10  ;;  %182 = vst [vmem:[%s426_s1 + $0x58] sm:$0xff] %v181_v11  ;;  %v185_v13 = vld [vmem:[%s425_s0 + $0x168] sm:$0xff]  ;;  %v187_v14 = vld [vmem:[%s425_s0 + $0x170] sm:$0xff] }
   0x8   :  { %184 = vst [vmem:[%s426_s1 + $0x60] sm:$0xff] %v183_v12  ;;  %186 = vst [vmem:[%s426_s1 + $0x68] sm:$0xff] %v185_v13  ;;  %v189_v15 = vld [vmem:[%s425_s0 + $0x178] sm:$0xff]  ;;  %v191_v16 = vld [vmem:[%s425_s0 + $0x180] sm:$0xff] }
   0x9   :  { %188 = vst [vmem:[%s426_s1 + $0x70] sm:$0xff] %v187_v14  ;;  %v193_v17 = vld [vmem:[%s425_s0 + $0x188] sm:$0xff]  ;;  %190 = vst [vmem:[%s426_s1 + $0x78] sm:$0xff] %v189_v15  ;;  %v195_v18 = vld [vmem:[%s425_s0 + $0x190] sm:$0xff] }
   0xa   :  { %192 = vst [vmem:[%s426_s1 + $0x80] sm:$0xff] %v191_v16  ;;  %194 = vst [vmem:[%s426_s1 + $0x88] sm:$0xff] %v193_v17  ;;  %v197_v19 = vld [vmem:[%s425_s0 + $0x198] sm:$0xff]  ;;  %v199_v20 = vld [vmem:[%s425_s0 + $0x1a0] sm:$0xff] }
   0xb   :  { %196 = vst [vmem:[%s426_s1 + $0x90] sm:$0xff] %v195_v18  ;;  %198 = vst [vmem:[%s426_s1 + $0x98] sm:$0xff] %v197_v19  ;;  %v201_v21 = vld [vmem:[%s425_s0 + $0x1a8] sm:$0xff]  ;;  %v203_v22 = vld [vmem:[%s425_s0 + $0x1b0] sm:$0xff] }
   0xc   :  { %200 = vst [vmem:[%s426_s1 + $0xa0] sm:$0xff] %v199_v20  ;;  %v205_v23 = vld [vmem:[%s425_s0 + $0x1b8] sm:$0xff]  ;;  %202 = vst [vmem:[%s426_s1 + $0xa8] sm:$0xff] %v201_v21  ;;  %v207_v24 = vld [vmem:[%s425_s0 + $0x1c0] sm:$0xff] }
   0xd   :  { %204 = vst [vmem:[%s426_s1 + $0xb0] sm:$0xff] %v203_v22  ;;  %206 = vst [vmem:[%s426_s1 + $0xb8] sm:$0xff] %v205_v23  ;;  %v209_v25 = vld [vmem:[%s425_s0 + $0x1c8] sm:$0xff]  ;;  %v211_v26 = vld [vmem:[%s425_s0 + $0x1d0] sm:$0xff] }
   0xe   :  { %208 = vst [vmem:[%s426_s1 + $0xc0] sm:$0xff] %v207_v24  ;;  %210 = vst [vmem:[%s426_s1 + $0xc8] sm:$0xff] %v209_v25  ;;  %v213_v27 = vld [vmem:[%s425_s0 + $0x1d8] sm:$0xff]  ;;  %v215_v28 = vld [vmem:[%s425_s0 + $0x1e0] sm:$0xff] }
   0xf   :  { %212 = vst [vmem:[%s426_s1 + $0xd0] sm:$0xff] %v211_v26  ;;  %v217_v29 = vld [vmem:[%s425_s0 + $0x1e8] sm:$0xff]  ;;  %214 = vst [vmem:[%s426_s1 + $0xd8] sm:$0xff] %v213_v27  ;;  %v219_v30 = vld [vmem:[%s425_s0 + $0x1f0] sm:$0xff] }
  0x10   :  { %216 = vst [vmem:[%s426_s1 + $0xe0] sm:$0xff] %v215_v28  ;;  %218 = vst [vmem:[%s426_s1 + $0xe8] sm:$0xff] %v217_v29  ;;  %v221_v31 = vld [vmem:[%s425_s0 + $0x1f8] sm:$0xff] }
  0x11   :  { %220 = vst [vmem:[%s426_s1 + $0xf0] sm:$0xff] %v219_v30  ;;  %222 = vst [vmem:[%s426_s1 + $0xf8] sm:$0xff] %v221_v31 }

// kernel: custom-call
= control target key start
LH: loop header
LB: loop body
LE: loop exit
PB: predicated region body
PF: predicated region fallthrough
CT: control target
= control target key end

     0   :  { %s392_s0 = inlined_call_operand.vmem [shape: c64[256,32], index: 0, kind: input, shape index: {}]   ;;  %s393_s1 = inlined_call_operand.vmem [shape: f32[256,32], index: 1, kind: output, shape index: {}]  }
   0x1   :  { %v2_v0 = vld [vmem:[%s392_s0] sm:$0xff]  ;;  %v128_v1 = vld [vmem:[%s392_s0 + $0x8] sm:$0xff]  ;;  %v130_v2 = vld [vmem:[%s392_s0 + $0x10] sm:$0xff] }
   0x2   :  { %3 = vst [vmem:[%s393_s1] sm:$0xff] %v2_v0  ;;  %129 = vst [vmem:[%s393_s1 + $0x8] sm:$0xff] %v128_v1  ;;  %v132_v3 = vld [vmem:[%s392_s0 + $0x18] sm:$0xff]  ;;  %v134_v4 = vld [vmem:[%s392_s0 + $0x20] sm:$0xff] }
   0x3   :  { %131 = vst [vmem:[%s393_s1 + $0x10] sm:$0xff] %v130_v2  ;;  %v136_v5 = vld [vmem:[%s392_s0 + $0x28] sm:$0xff]  ;;  %133 = vst [vmem:[%s393_s1 + $0x18] sm:$0xff] %v132_v3  ;;  %v138_v6 = vld [vmem:[%s392_s0 + $0x30] sm:$0xff] }
   0x4   :  { %135 = vst [vmem:[%s393_s1 + $0x20] sm:$0xff] %v134_v4  ;;  %137 = vst [vmem:[%s393_s1 + $0x28] sm:$0xff] %v136_v5  ;;  %v140_v7 = vld [vmem:[%s392_s0 + $0x38] sm:$0xff]  ;;  %v142_v8 = vld [vmem:[%s392_s0 + $0x40] sm:$0xff] }
   0x5   :  { %139 = vst [vmem:[%s393_s1 + $0x30] sm:$0xff] %v138_v6  ;;  %141 = vst [vmem:[%s393_s1 + $0x38] sm:$0xff] %v140_v7  ;;  %v144_v9 = vld [vmem:[%s392_s0 + $0x48] sm:$0xff]  ;;  %v146_v10 = vld [vmem:[%s392_s0 + $0x50] sm:$0xff] }
   0x6   :  { %143 = vst [vmem:[%s393_s1 + $0x40] sm:$0xff] %v142_v8  ;;  %v148_v11 = vld [vmem:[%s392_s0 + $0x58] sm:$0xff]  ;;  %145 = vst [vmem:[%s393_s1 + $0x48] sm:$0xff] %v144_v9  ;;  %v150_v12 = vld [vmem:[%s392_s0 + $0x60] sm:$0xff] }
   0x7   :  { %147 = vst [vmem:[%s393_s1 + $0x50] sm:$0xff] %v146_v10  ;;  %149 = vst [vmem:[%s393_s1 + $0x58] sm:$0xff] %v148_v11  ;;  %v152_v13 = vld [vmem:[%s392_s0 + $0x68] sm:$0xff]  ;;  %v154_v14 = vld [vmem:[%s392_s0 + $0x70] sm:$0xff] }
   0x8   :  { %151 = vst [vmem:[%s393_s1 + $0x60] sm:$0xff] %v150_v12  ;;  %153 = vst [vmem:[%s393_s1 + $0x68] sm:$0xff] %v152_v13  ;;  %v156_v15 = vld [vmem:[%s392_s0 + $0x78] sm:$0xff]  ;;  %v158_v16 = vld [vmem:[%s392_s0 + $0x80] sm:$0xff] }
   0x9   :  { %155 = vst [vmem:[%s393_s1 + $0x70] sm:$0xff] %v154_v14  ;;  %v160_v17 = vld [vmem:[%s392_s0 + $0x88] sm:$0xff]  ;;  %157 = vst [vmem:[%s393_s1 + $0x78] sm:$0xff] %v156_v15  ;;  %v162_v18 = vld [vmem:[%s392_s0 + $0x90] sm:$0xff] }
   0xa   :  { %159 = vst [vmem:[%s393_s1 + $0x80] sm:$0xff] %v158_v16  ;;  %161 = vst [vmem:[%s393_s1 + $0x88] sm:$0xff] %v160_v17  ;;  %v164_v19 = vld [vmem:[%s392_s0 + $0x98] sm:$0xff]  ;;  %v166_v20 = vld [vmem:[%s392_s0 + $0xa0] sm:$0xff] }
   0xb   :  { %163 = vst [vmem:[%s393_s1 + $0x90] sm:$0xff] %v162_v18  ;;  %165 = vst [vmem:[%s393_s1 + $0x98] sm:$0xff] %v164_v19  ;;  %v168_v21 = vld [vmem:[%s392_s0 + $0xa8] sm:$0xff]  ;;  %v170_v22 = vld [vmem:[%s392_s0 + $0xb0] sm:$0xff] }
   0xc   :  { %167 = vst [vmem:[%s393_s1 + $0xa0] sm:$0xff] %v166_v20  ;;  %v172_v23 = vld [vmem:[%s392_s0 + $0xb8] sm:$0xff]  ;;  %169 = vst [vmem:[%s393_s1 + $0xa8] sm:$0xff] %v168_v21  ;;  %v174_v24 = vld [vmem:[%s392_s0 + $0xc0] sm:$0xff] }
   0xd   :  { %171 = vst [vmem:[%s393_s1 + $0xb0] sm:$0xff] %v170_v22  ;;  %173 = vst [vmem:[%s393_s1 + $0xb8] sm:$0xff] %v172_v23  ;;  %v176_v25 = vld [vmem:[%s392_s0 + $0xc8] sm:$0xff]  ;;  %v178_v26 = vld [vmem:[%s392_s0 + $0xd0] sm:$0xff] }
   0xe   :  { %175 = vst [vmem:[%s393_s1 + $0xc0] sm:$0xff] %v174_v24  ;;  %177 = vst [vmem:[%s393_s1 + $0xc8] sm:$0xff] %v176_v25  ;;  %v180_v27 = vld [vmem:[%s392_s0 + $0xd8] sm:$0xff]  ;;  %v182_v28 = vld [vmem:[%s392_s0 + $0xe0] sm:$0xff] }
   0xf   :  { %179 = vst [vmem:[%s393_s1 + $0xd0] sm:$0xff] %v178_v26  ;;  %v184_v29 = vld [vmem:[%s392_s0 + $0xe8] sm:$0xff]  ;;  %181 = vst [vmem:[%s393_s1 + $0xd8] sm:$0xff] %v180_v27  ;;  %v186_v30 = vld [vmem:[%s392_s0 + $0xf0] sm:$0xff] }
  0x10   :  { %183 = vst [vmem:[%s393_s1 + $0xe0] sm:$0xff] %v182_v28  ;;  %185 = vst [vmem:[%s393_s1 + $0xe8] sm:$0xff] %v184_v29  ;;  %v188_v31 = vld [vmem:[%s392_s0 + $0xf8] sm:$0xff] }
  0x11   :  { %187 = vst [vmem:[%s393_s1 + $0xf0] sm:$0xff] %v186_v30  ;;  %189 = vst [vmem:[%s393_s1 + $0xf8] sm:$0xff] %v188_v31 }

</bundles_post_ra>
